<compile_context>
chip_gen: v5e
topology: v5e:2x2
jax: 0.10.0
libtpu: 0.0.40
codegen_flags: <defaults>
</compile_context>

<pallas_src>
import jax
import jax.numpy as jnp
from jax.experimental import pallas as pl
from jax.experimental.pallas import tpu as pltpu

_MAX_ROW_TILE = 1024                    # ~85% of HBM roofline per measured tiling data
_X_TILE_BYTE_BUDGET = 4 * 1024 * 1024   # per X-tile buffer; x2 double-buffered ~= 8 MiB


def _round_up(x, m):
    return (x + m - 1) // m * m


def _pick_row_tile(n_rows, num_inputs, itemsize):
    """Largest MXU-friendly row tile that keeps the double-buffered X working set
    comfortably inside the default scoped VMEM on v5e / v6e / v7x."""
    rows_by_vmem = _X_TILE_BYTE_BUDGET // max(num_inputs * itemsize, 1)
    rows_by_vmem = max(8, (rows_by_vmem // 8) * 8)
    tm = min(_MAX_ROW_TILE, rows_by_vmem, _round_up(n_rows, 8))
    return max(8, tm)


def nsp_kernel(x_ref,   # (TM, NI)  row tile of flattened inputs
               w_ref,   # (NI, 2)   weight, (in, out) layout
               b_ref,   # (1, 2)    bias
               o_ref):  # (TM, 2)   output tile (narrow store; partial-lane vst)
    y = jnp.dot(x_ref[...], w_ref[...], preferred_element_type=jnp.float32)
    o_ref[...] = (y + b_ref[...].astype(jnp.float32)).astype(o_ref.dtype)


@jax.jit
def next_sentence_pred_forward(X, w, b):
    """X: (..., NI);  w: (NI, 2) [i.e. torch weight transposed];  b: (2,)."""
    NI = X.shape[-1]
    OUT = w.shape[1]
    lead_shape = X.shape[:-1]

    Xf = X.reshape(-1, NI)
    R = Xf.shape[0]

    tm = _pick_row_tile(R, NI, Xf.dtype.itemsize)
    grid = (pl.cdiv(R, tm),)   # ragged last block handled by Pallas; no row padding

    out = pl.pallas_call(
        nsp_kernel,
        out_shape=jax.ShapeDtypeStruct((R, OUT), X.dtype),
        grid=grid,
        in_specs=[
            pl.BlockSpec((tm, NI), lambda i: (i, 0)),
            pl.BlockSpec((NI, OUT), lambda i: (0, 0)),   # resident weight
            pl.BlockSpec((1, OUT), lambda i: (0, 0)),    # resident bias
        ],
        out_specs=pl.BlockSpec((tm, OUT), lambda i: (i, 0)),
        compiler_params=pltpu.CompilerParams(
            dimension_semantics=("parallel",)),
    )(Xf, w, b.reshape(1, OUT))

    return out.reshape(*lead_shape, OUT)


def reference_forward(X, w, b):
    """Pure-JAX reference of NextSentencePred.forward for validation."""
    return X @ w + b


if __name__ == "__main__":
    num_inputs = 768
    num_outputs = 2

    key = jax.random.PRNGKey(0)
    kx, kw, kb, kx2 = jax.random.split(key, 4)

    # PyTorch Linear-style uniform init; weight stored as (in, out).
    bound = 1.0 / (num_inputs ** 0.5)
    w = jax.random.uniform(kw, (num_inputs, num_outputs), jnp.float32,
                           -bound, bound)
    b = jax.random.uniform(kb, (num_outputs,), jnp.float32, -bound, bound)

    # Case 1: classic NSP usage -- (batch, num_inputs) [CLS] representations.
    X1 = jax.random.normal(kx, (16, num_inputs), dtype=jnp.float32)
    y1 = jax.block_until_ready(next_sentence_pred_forward(X1, w, b))
    y1_ref = reference_forward(X1, w, b)
    assert y1.shape == (16, num_outputs), y1.shape
    assert jnp.allclose(y1, y1_ref, rtol=1e-4, atol=1e-4), "mismatch vs reference (2D)"

    # Case 2: 3D leading dims with a row count that exercises a multi-step grid
    # and a ragged last block (4*300 = 1200 rows > 1024-row tile).
    X2 = jax.random.normal(kx2, (4, 300, num_inputs), dtype=jnp.float32)
    y2 = jax.block_until_ready(next_sentence_pred_forward(X2, w, b))
    y2_ref = reference_forward(X2, w, b)
    assert y2.shape == (4, 300, num_outputs), y2.shape
    assert jnp.allclose(y2, y2_ref, rtol=1e-4, atol=1e-4), "mismatch vs reference (3D)"

    print("KERNEL_OK")
</pallas_src>

<mosaic_0001>
module attributes {stable_mosaic.version = 11 : i64} {
  func.func @nsp_kernel(%arg0: i32, %arg1: memref<16x768xf32, #tpu.memory_space<vmem>>, %arg2: memref<768x2xf32, #tpu.memory_space<vmem>>, %arg3: memref<1x2xf32, #tpu.memory_space<vmem>>, %arg4: memref<16x2xf32, #tpu.memory_space<vmem>>) attributes {dimension_semantics = [#tpu.dimension_semantics<parallel>], iteration_bounds = array<i64: 1>, scalar_prefetch = 0 : i64, scratch_operands = 0 : i64, tpu.core_type = #tpu.core_type<tc>, window_params = [{transform_indices = @transform_0, window_bounds = array<i64: 16, 768>}, {pipeline_mode = #tpu.pipeline_mode<synchronous>, transform_indices = @transform_1, window_bounds = array<i64: 768, 2>}, {pipeline_mode = #tpu.pipeline_mode<synchronous>, transform_indices = @transform_2, window_bounds = array<i64: 1, 2>}, {transform_indices = @transform_3, window_bounds = array<i64: 16, 2>}]} {
    %c0 = arith.constant 0 : index
    %c0_0 = arith.constant 0 : index
    %0 = vector.load %arg1[%c0, %c0_0] : memref<16x768xf32, #tpu.memory_space<vmem>>, vector<16x768xf32>
    %c0_1 = arith.constant 0 : index
    %c0_2 = arith.constant 0 : index
    %1 = vector.load %arg2[%c0_1, %c0_2] : memref<768x2xf32, #tpu.memory_space<vmem>>, vector<768x2xf32>
    %cst = arith.constant dense<0.000000e+00> : vector<16x2xf32>
    %2 = tpu.matmul %0, %1, %cst {dimension_numbers = #tpu.dot_dimension_numbers<[1], [0], [0], [1], [0, 0, 1, 1], [], []>} : vector<16x768xf32>, vector<768x2xf32>, vector<16x2xf32> -> vector<16x2xf32>
    %c0_3 = arith.constant 0 : index
    %c0_4 = arith.constant 0 : index
    %3 = vector.load %arg3[%c0_3, %c0_4] : memref<1x2xf32, #tpu.memory_space<vmem>>, vector<1x2xf32>
    %4 = vector.broadcast %3 : vector<1x2xf32> to vector<16x2xf32>
    %5 = arith.addf %2, %4 : vector<16x2xf32>
    %c0_5 = arith.constant 0 : index
    %c0_6 = arith.constant 0 : index
    %6 = vector.load %arg4[%c0_5, %c0_6] : memref<16x2xf32, #tpu.memory_space<vmem>>, vector<16x2xf32>
    tpu.vector_store %arg4[%c0_5, %c0_6], %5 {strides = array<i32>} : memref<16x2xf32, #tpu.memory_space<vmem>>, vector<16x2xf32>,
    return
  }
  func.func @transform_0(%arg0: i32) -> (i32, i32) {
    %c0_i32 = arith.constant 0 : i32
    %c0_i32_0 = arith.constant 0 : i32
    return %arg0, %c0_i32 : i32, i32
  }
  func.func @transform_1(%arg0: i32) -> (i32, i32) {
    %c0_i32 = arith.constant 0 : i32
    %c0_i32_0 = arith.constant 0 : i32
    %c0_i32_1 = arith.constant 0 : i32
    return %c0_i32, %c0_i32_0 : i32, i32
  }
  func.func @transform_2(%arg0: i32) -> (i32, i32) {
    %c0_i32 = arith.constant 0 : i32
    %c0_i32_0 = arith.constant 0 : i32
    %c0_i32_1 = arith.constant 0 : i32
    return %c0_i32, %c0_i32_0 : i32, i32
  }
  func.func @transform_3(%arg0: i32) -> (i32, i32) {
    %c0_i32 = arith.constant 0 : i32
    %c0_i32_0 = arith.constant 0 : i32
    return %arg0, %c0_i32 : i32, i32
  }
}

</mosaic_0001>

<bundles_post_ra>
// kernel: next_sentence_pred_forward.1
= control target key start
LH: loop header
LB: loop body
LE: loop exit
PB: predicated region body
PF: predicated region fallthrough
CT: control target
= control target key end

     0   :  { %vm264_vm0 = vcmask 15360   ;;  %s657_s1 = inlined_call_operand.vmem [shape: f32[768,2], index: 1, kind: input, shape index: {}]   ;;  %s658_s2 = inlined_call_operand.vmem [shape: f32[1,2], index: 2, kind: input, shape index: {}]   ;;  %s659_s0 = inlined_call_operand.vmem [shape: f32[16,768], index: 0, kind: input, shape index: {}]   ;;  %s660_s3 = inlined_call_operand.vmem [shape: f32[16,2], index: 3, kind: output, shape index: {}]  }
   0x1   :  { %v41_v0 = vld [vmem:[%s657_s1 + $0x78] sm:$0xff]  ;;  %v40_v2 = vld [vmem:[%s657_s1 + $0x70] sm:$0xff]  ;;  %v39_v6 = vld [vmem:[%s657_s1 + $0x68] sm:$0xff] }
   0x2   :  { %v73_v1 = vld [vmem:[%s657_s1 + $0x178] sm:$0xff]  ;;  %126 = vmatpush.msra.mxu0 %v41_v0  ;;  %v72_v4 = vld [vmem:[%s657_s1 + $0x170] sm:$0xff]  ;;  %v71_v8 = vld [vmem:[%s657_s1 + $0x168] sm:$0xff] }
   0x3   :  { %172 = vmatpush.msra.mxu2 %v73_v1  ;;  %v57_v3 = vld [vmem:[%s657_s1 + $0xf8] sm:$0xff]  ;;  %v56_v7 = vld [vmem:[%s657_s1 + $0xf0] sm:$0xff]  ;;  %v55_v10 = vld [vmem:[%s657_s1 + $0xe8] sm:$0xff] }
   0x4   :  { %v89_v5 = vld [vmem:[%s657_s1 + $0x1f8] sm:$0xff]  ;;  %149 = vmatpush.msra.mxu1 %v57_v3  ;;  %127 = vmatpush.msra.mxu0 %v40_v2  ;;  %v88_v9 = vld [vmem:[%s657_s1 + $0x1f0] sm:$0xff]  ;;  %v38_v11 = vld [vmem:[%s657_s1 + $0x60] sm:$0xff] }
   0x5   :  { %195 = vmatpush.msra.mxu3 %v89_v5  ;;  %173 = vmatpush.msra.mxu2 %v72_v4  ;;  %v70_v12 = vld [vmem:[%s657_s1 + $0x160] sm:$0xff]  ;;  %v87_v13 = vld [vmem:[%s657_s1 + $0x1e8] sm:$0xff]  ;;  %v37_v16 = vld [vmem:[%s657_s1 + $0x58] sm:$0xff] }
   0x6   :  { %150 = vmatpush.msra.mxu1 %v56_v7  ;;  %128 = vmatpush.msra.mxu0 %v39_v6  ;;  %v54_v14 = vld [vmem:[%s657_s1 + $0xe0] sm:$0xff]  ;;  %v69_v17 = vld [vmem:[%s657_s1 + $0x158] sm:$0xff]  ;;  %v36_v20 = vld [vmem:[%s657_s1 + $0x50] sm:$0xff] }
   0x7   :  { %196 = vmatpush.msra.mxu3 %v88_v9  ;;  %174 = vmatpush.msra.mxu2 %v71_v8  ;;  %v86_v15 = vld [vmem:[%s657_s1 + $0x1e0] sm:$0xff]  ;;  %v53_v18 = vld [vmem:[%s657_s1 + $0xd8] sm:$0xff]  ;;  %v68_v21 = vld [vmem:[%s657_s1 + $0x150] sm:$0xff] }
   0x8   :  { %151 = vmatpush.msra.mxu1 %v55_v10  ;;  %129 = vmatpush.msra.mxu0 %v38_v11  ;;  %v85_v19 = vld [vmem:[%s657_s1 + $0x1d8] sm:$0xff]  ;;  %v52_v22 = vld [vmem:[%s657_s1 + $0xd0] sm:$0xff]  ;;  %v35_v24 = vld [vmem:[%s657_s1 + $0x48] sm:$0xff] }
   0x9   :  { %197 = vmatpush.msra.mxu3 %v87_v13  ;;  %175 = vmatpush.msra.mxu2 %v70_v12  ;;  %v84_v23 = vld [vmem:[%s657_s1 + $0x1d0] sm:$0xff]  ;;  %v67_v25 = vld [vmem:[%s657_s1 + $0x148] sm:$0xff]  ;;  %v34_v28 = vld [vmem:[%s657_s1 + $0x40] sm:$0xff] }
   0xa   :  { %152 = vmatpush.msra.mxu1 %v54_v14  ;;  %130 = vmatpush.msra.mxu0 %v37_v16  ;;  %v51_v26 = vld [vmem:[%s657_s1 + $0xc8] sm:$0xff]  ;;  %v66_v29 = vld [vmem:[%s657_s1 + $0x140] sm:$0xff]  ;;  %v33_v32 = vld [vmem:[%s657_s1 + $0x38] sm:$0xff] }
   0xb   :  { %198 = vmatpush.msra.mxu3 %v86_v15  ;;  %176 = vmatpush.msra.mxu2 %v69_v17  ;;  %v83_v27 = vld [vmem:[%s657_s1 + $0x1c8] sm:$0xff]  ;;  %v50_v30 = vld [vmem:[%s657_s1 + $0xc0] sm:$0xff]  ;;  %v65_v33 = vld [vmem:[%s657_s1 + $0x138] sm:$0xff] }
   0xc   :  { %153 = vmatpush.msra.mxu1 %v53_v18  ;;  %131 = vmatpush.msra.mxu0 %v36_v20  ;;  %v82_v31 = vld [vmem:[%s657_s1 + $0x1c0] sm:$0xff]  ;;  %v49_v34 = vld [vmem:[%s657_s1 + $0xb8] sm:$0xff]  ;;  %v32_v36 = vld [vmem:[%s657_s1 + $0x30] sm:$0xff] }
   0xd   :  { %199 = vmatpush.msra.mxu3 %v85_v19  ;;  %177 = vmatpush.msra.mxu2 %v68_v21  ;;  %v81_v35 = vld [vmem:[%s657_s1 + $0x1b8] sm:$0xff]  ;;  %v64_v37 = vld [vmem:[%s657_s1 + $0x130] sm:$0xff]  ;;  %v31_v40 = vld [vmem:[%s657_s1 + $0x28] sm:$0xff] }
   0xe   :  { %154 = vmatpush.msra.mxu1 %v52_v22  ;;  %132 = vmatpush.msra.mxu0 %v35_v24  ;;  %v48_v38 = vld [vmem:[%s657_s1 + $0xb0] sm:$0xff]  ;;  %v63_v41 = vld [vmem:[%s657_s1 + $0x128] sm:$0xff]  ;;  %v30_v44 = vld [vmem:[%s657_s1 + $0x20] sm:$0xff] }
   0xf   :  { %200 = vmatpush.msra.mxu3 %v84_v23  ;;  %178 = vmatpush.msra.mxu2 %v67_v25  ;;  %v80_v39 = vld [vmem:[%s657_s1 + $0x1b0] sm:$0xff]  ;;  %v47_v42 = vld [vmem:[%s657_s1 + $0xa8] sm:$0xff]  ;;  %v62_v45 = vld [vmem:[%s657_s1 + $0x120] sm:$0xff] }
  0x10   :  { %155 = vmatpush.msra.mxu1 %v51_v26  ;;  %133 = vmatpush.msra.mxu0 %v34_v28  ;;  %v79_v43 = vld [vmem:[%s657_s1 + $0x1a8] sm:$0xff]  ;;  %v46_v46 = vld [vmem:[%s657_s1 + $0xa0] sm:$0xff]  ;;  %v29_v48 = vld [vmem:[%s657_s1 + $0x18] sm:$0xff] }
  0x11   :  { %201 = vmatpush.msra.mxu3 %v83_v27  ;;  %179 = vmatpush.msra.mxu2 %v66_v29  ;;  %v78_v47 = vld [vmem:[%s657_s1 + $0x1a0] sm:$0xff]  ;;  %v61_v49 = vld [vmem:[%s657_s1 + $0x118] sm:$0xff]  ;;  %v28_v52 = vld [vmem:[%s657_s1 + $0x10] sm:$0xff] }
  0x12   :  { %156 = vmatpush.msra.mxu1 %v50_v30  ;;  %134 = vmatpush.msra.mxu0 %v33_v32  ;;  %v45_v50 = vld [vmem:[%s657_s1 + $0x98] sm:$0xff]  ;;  %v60_v53 = vld [vmem:[%s657_s1 + $0x110] sm:$0xff]  ;;  %v27_v56 = vld [vmem:[%s657_s1 + $0x8] sm:$0xff] }
  0x13   :  { %202 = vmatpush.msra.mxu3 %v82_v31  ;;  %180 = vmatpush.msra.mxu2 %v65_v33  ;;  %v77_v51 = vld [vmem:[%s657_s1 + $0x198] sm:$0xff]  ;;  %v44_v54 = vld [vmem:[%s657_s1 + $0x90] sm:$0xff]  ;;  %v59_v57 = vld [vmem:[%s657_s1 + $0x108] sm:$0xff] }
  0x14   :  { %157 = vmatpush.msra.mxu1 %v49_v34  ;;  %135 = vmatpush.msra.mxu0 %v32_v36  ;;  %v76_v55 = vld [vmem:[%s657_s1 + $0x190] sm:$0xff]  ;;  %v43_v58 = vld [vmem:[%s657_s1 + $0x88] sm:$0xff]  ;;  %v26_v60 = vld [vmem:[%s657_s1] sm:$0xff] }
  0x15   :  { %203 = vmatpush.msra.mxu3 %v81_v35  ;;  %181 = vmatpush.msra.mxu2 %v64_v37  ;;  %v75_v59 = vld [vmem:[%s657_s1 + $0x188] sm:$0xff]  ;;  %v58_v61 = vld [vmem:[%s657_s1 + $0x100] sm:$0xff]  ;;  %v105_v62 = vld [vmem:[%s657_s1 + $0x278] sm:$0xff] }
  0x16   :  { %158 = vmatpush.msra.mxu1 %v48_v38  ;;  %136 = vmatpush.msra.mxu0 %v31_v40  ;;  %v42_v63 = vld [vmem:[%s657_s1 + $0x80] sm:$0xff]  ;;  %v104_v1 = vld [vmem:[%s657_s1 + $0x270] sm:$0xff]  ;;  %v121_v2 = vld [vmem:[%s657_s1 + $0x2f8] sm:$0xff] }
  0x17   :  { %204 = vmatpush.msra.mxu3 %v80_v39  ;;  %182 = vmatpush.msra.mxu2 %v63_v41  ;;  %v74_v0 = vld [vmem:[%s657_s1 + $0x180] sm:$0xff]  ;;  %v103_v3 = vld [vmem:[%s657_s1 + $0x268] sm:$0xff]  ;;  %v120_v4 = vld [vmem:[%s657_s1 + $0x2f0] sm:$0xff] }
  0x18   :  { %159 = vmatpush.msra.mxu1 %v47_v42  ;;  %137 = vmatpush.msra.mxu0 %v30_v44  ;;  %v102_v5 = vld [vmem:[%s657_s1 + $0x260] sm:$0xff]  ;;  %v119_v6 = vld [vmem:[%s657_s1 + $0x2e8] sm:$0xff]  ;;  %v101_v7 = vld [vmem:[%s657_s1 + $0x258] sm:$0xff] }
  0x19   :  { %205 = vmatpush.msra.mxu3 %v79_v43  ;;  %183 = vmatpush.msra.mxu2 %v62_v45  ;;  %v118_v8 = vld [vmem:[%s657_s1 + $0x2e0] sm:$0xff]  ;;  %v100_v9 = vld [vmem:[%s657_s1 + $0x250] sm:$0xff]  ;;  %v117_v10 = vld [vmem:[%s657_s1 + $0x2d8] sm:$0xff] }
  0x1a   :  { %160 = vmatpush.msra.mxu1 %v46_v46  ;;  %138 = vmatpush.msra.mxu0 %v29_v48  ;;  %v99_v11 = vld [vmem:[%s657_s1 + $0x248] sm:$0xff]  ;;  %v116_v12 = vld [vmem:[%s657_s1 + $0x2d0] sm:$0xff]  ;;  %v98_v13 = vld [vmem:[%s657_s1 + $0x240] sm:$0xff] }
  0x1b   :  { %206 = vmatpush.msra.mxu3 %v78_v47  ;;  %184 = vmatpush.msra.mxu2 %v61_v49  ;;  %v115_v14 = vld [vmem:[%s657_s1 + $0x2c8] sm:$0xff]  ;;  %v14_v15 = vld [vmem:[%s659_s0] sm:$0xff]  ;;  %v16_v16 = vld [vmem:[%s659_s0 + $0x10] sm:$0xff] }
  0x1c   :  { %161 = vmatpush.msra.mxu1 %v45_v50  ;;  %139 = vmatpush.msra.mxu0 %v28_v52  ;;  %v97_v17 = vld [vmem:[%s657_s1 + $0x238] sm:$0xff]  ;;  %v114_v18 = vld [vmem:[%s657_s1 + $0x2c0] sm:$0xff]  ;;  %v15_v19 = vld [vmem:[%s659_s0 + $0x8] sm:$0xff] }
  0x1d   :  { %207 = vmatpush.msra.mxu3 %v77_v51  ;;  %185 = vmatpush.msra.mxu2 %v60_v53  ;;  %v17_v20 = vld [vmem:[%s659_s0 + $0x18] sm:$0xff]  ;;  %v96_v21 = vld [vmem:[%s657_s1 + $0x230] sm:$0xff]  ;;  %v95_v23 = vld [vmem:[%s657_s1 + $0x228] sm:$0xff] }
  0x1e   :  { %162 = vmatpush.msra.mxu1 %v44_v54  ;;  %140 = vmatpush.msra.mxu0 %v27_v56  ;;  %v113_v22 = vld [vmem:[%s657_s1 + $0x2b8] sm:$0xff]  ;;  %v112_v24 = vld [vmem:[%s657_s1 + $0x2b0] sm:$0xff]  ;;  %v94_v25 = vld [vmem:[%s657_s1 + $0x220] sm:$0xff] }
  0x1f   :  { %208 = vmatpush.msra.mxu3 %v76_v55  ;;  %186 = vmatpush.msra.mxu2 %v59_v57  ;;  %v111_v26 = vld [vmem:[%s657_s1 + $0x2a8] sm:$0xff]  ;;  %v20_v27 = vld [vmem:[%s659_s0 + $0x30] sm:$0xff]  ;;  %v22_v28 = vld [vmem:[%s659_s0 + $0x40] sm:$0xff] }
  0x20   :  { %163 = vmatpush.msra.mxu1 %v43_v58  ;;  %141 = vmatpush.msra.mxu0 %v26_v60  ;;  %v93_v29 = vld [vmem:[%s657_s1 + $0x218] sm:$0xff]  ;;  %v110_v30 = vld [vmem:[%s657_s1 + $0x2a0] sm:$0xff]  ;;  %v23_v32 = vld [vmem:[%s659_s0 + $0x48] sm:$0xff] }
  0x21   :  { %209 = vmatpush.msra.mxu3 %v75_v59  ;;  %187 = vmatpush.msra.mxu2 %v58_v61  ;;  %v21_v31 = vld [vmem:[%s659_s0 + $0x38] sm:$0xff]  ;;  %v92_v33 = vld [vmem:[%s657_s1 + $0x210] sm:$0xff]  ;;  %v91_v35 = vld [vmem:[%s657_s1 + $0x208] sm:$0xff] }
  0x22   :  { %218 = vmatpush.msrb.mxu0 %v105_v62  ;;  %164 = vmatpush.msra.mxu1 %v42_v63  ;;  %v109_v34 = vld [vmem:[%s657_s1 + $0x298] sm:$0xff]  ;;  %v108_v36 = vld [vmem:[%s657_s1 + $0x290] sm:$0xff]  ;;  %v90_v37 = vld [vmem:[%s657_s1 + $0x200] sm:$0xff] }
  0x23   :  { %271 = vmatpush.msrb.mxu2 %v105_v62  ;;  %210 = vmatpush.msra.mxu3 %v74_v0  ;;  %v107_v38 = vld [vmem:[%s657_s1 + $0x288] sm:$0xff]  ;;  %v18_v39 = vld [vmem:[%s659_s0 + $0x20] sm:$0xff]  ;;  %v24_v40 = vld [vmem:[%s659_s0 + $0x50] sm:$0xff] }
  0x24   :  { %219 = vmatpush.msrb.mxu0 %v104_v1  ;;  %241 = vmatpush.msrb.mxu1 %v121_v2  ;;  %v106_v41 = vld [vmem:[%s657_s1 + $0x280] sm:$0xff]  ;;  %v19_v42 = vld [vmem:[%s659_s0 + $0x28] sm:$0xff]  ;;  %v25_v43 = vld [vmem:[%s659_s0 + $0x58] sm:$0xff] }
  0x25   :  { %272 = vmatpush.msrb.mxu2 %v104_v1  ;;  %287 = vmatpush.msrb.mxu3 %v121_v2  ;;  %v303_v45 = vld [vmem:[%s658_s2] ss:$0 sm:$0xff] }
  0x26   :  { %220 = vmatpush.msrb.mxu0 %v103_v3  ;;  %242 = vmatpush.msrb.mxu1 %v120_v4 }
  0x27   :  { %273 = vmatpush.msrb.mxu2 %v103_v3  ;;  %288 = vmatpush.msrb.mxu3 %v120_v4 }
  0x28   :  { %221 = vmatpush.msrb.mxu0 %v102_v5  ;;  %243 = vmatpush.msrb.mxu1 %v119_v6 }
  0x29   :  { %274 = vmatpush.msrb.mxu2 %v102_v5  ;;  %289 = vmatpush.msrb.mxu3 %v119_v6 }
  0x2a   :  { %222 = vmatpush.msrb.mxu0 %v101_v7  ;;  %244 = vmatpush.msrb.mxu1 %v118_v8 }
  0x2b   :  { %275 = vmatpush.msrb.mxu2 %v101_v7  ;;  %290 = vmatpush.msrb.mxu3 %v118_v8 }
  0x2c   :  { %223 = vmatpush.msrb.mxu0 %v100_v9  ;;  %245 = vmatpush.msrb.mxu1 %v117_v10 }
  0x2d   :  { %276 = vmatpush.msrb.mxu2 %v100_v9  ;;  %291 = vmatpush.msrb.mxu3 %v117_v10 }
  0x2e   :  { %224 = vmatpush.msrb.mxu0 %v99_v11  ;;  %246 = vmatpush.msrb.mxu1 %v116_v12 }
  0x2f   :  { %277 = vmatpush.msrb.mxu2 %v99_v11  ;;  %292 = vmatpush.msrb.mxu3 %v116_v12 }
  0x30   :  { %225 = vmatpush.msrb.mxu0 %v98_v13  ;;  %247 = vmatpush.msrb.mxu1 %v115_v14 }
  0x31   :  { %278 = vmatpush.msrb.mxu2 %v98_v13  ;;  %293 = vmatpush.msrb.mxu3 %v115_v14 }
  0x32   :  { %142 = vmatmul.f32.vlgmr.msra.gmra.mxu0 %v14_v15  ;;  %188 = vmatmul.f32.vlgmr.msra.gmra.mxu2 %v16_v16 }
  0x33   :  { %226 = vmatpush.msrb.mxu0 %v97_v17  ;;  %279 = vmatpush.msrb.mxu2 %v97_v17 }
  0x34   :  { %248 = vmatpush.msrb.mxu1 %v114_v18  ;;  %294 = vmatpush.msrb.mxu3 %v114_v18 }
  0x35   :  { %165 = vmatmul.f32.vlgmr.msra.gmra.mxu1 %v15_v19  ;;  %211 = vmatmul.f32.vlgmr.msra.gmra.mxu3 %v17_v20 }
  0x36   :  { %227 = vmatpush.msrb.mxu0 %v96_v21  ;;  %280 = vmatpush.msrb.mxu2 %v96_v21 }
  0x37   :  { %249 = vmatpush.msrb.mxu1 %v113_v22  ;;  %295 = vmatpush.msrb.mxu3 %v113_v22 }
  0x38   :  { %228 = vmatpush.msrb.mxu0 %v95_v23  ;;  %281 = vmatpush.msrb.mxu2 %v95_v23 }
  0x39   :  { %250 = vmatpush.msrb.mxu1 %v112_v24  ;;  %296 = vmatpush.msrb.mxu3 %v112_v24 }
  0x3a   :  { %229 = vmatpush.msrb.mxu0 %v94_v25  ;;  %282 = vmatpush.msrb.mxu2 %v94_v25 }
  0x3b   :  { %251 = vmatpush.msrb.mxu1 %v111_v26  ;;  %297 = vmatpush.msrb.mxu3 %v111_v26 }
  0x3c   :  { %145 = vmatmul.f32.gmra.mxu0 %v20_v27  ;;  %191 = vmatmul.f32.gmra.mxu2 %v22_v28 }
  0x3d   :  { %230 = vmatpush.msrb.mxu0 %v93_v29  ;;  %283 = vmatpush.msrb.mxu2 %v93_v29 }
  0x3e   :  { %252 = vmatpush.msrb.mxu1 %v110_v30  ;;  %298 = vmatpush.msrb.mxu3 %v110_v30 }
  0x3f   :  { %168 = vmatmul.f32.gmra.mxu1 %v21_v31  ;;  %214 = vmatmul.f32.gmra.mxu3 %v23_v32 }
  0x40   :  { %231 = vmatpush.msrb.mxu0 %v92_v33  ;;  %284 = vmatpush.msrb.mxu2 %v92_v33 }
  0x41   :  { %253 = vmatpush.msrb.mxu1 %v109_v34  ;;  %299 = vmatpush.msrb.mxu3 %v109_v34 }
  0x42   :  { %232 = vmatpush.msrb.mxu0 %v91_v35  ;;  %285 = vmatpush.msrb.mxu2 %v91_v35 }
  0x43   :  { %254 = vmatpush.msrb.mxu1 %v108_v36  ;;  %300 = vmatpush.msrb.mxu3 %v108_v36 }
  0x44   :  { %233 = vmatpush.msrb.mxu0 %v90_v37  ;;  %286 = vmatpush.msrb.mxu2 %v90_v37 }
  0x45   :  { %255 = vmatpush.msrb.mxu1 %v107_v38  ;;  %301 = vmatpush.msrb.mxu3 %v107_v38 }
  0x46   :  { %234 = vmatmul.f32.vlgmr.msrb.gmra.mxu0 %v18_v39  ;;  %237 = vmatmul.f32.vlgmr.msrb.gmra.mxu2 %v24_v40 }
  0x47   :  { %256 = vmatpush.msrb.mxu1 %v106_v41  ;;  %302 = vmatpush.msrb.mxu3 %v106_v41 }
  0x48   :  { %257 = vmatmul.f32.vlgmr.msrb.gmra.mxu1 %v19_v42  ;;  %260 = vmatmul.f32.vlgmr.msrb.gmra.mxu3 %v25_v43 }
  0xaf   :  { %v143_v44 = vpop.f32.mrf.mxu0 }
  0xb0   :  { %v144_v48 = vadd.f32 %v303_v45, %v143_v44 }
  0xb2   :  { %v166_v46 = vpop.f32.mrf.mxu1 }
  0xb3   :  { %v167_v51 = vadd.f32 %v166_v46, %v144_v48 }
  0xb5   :  { %v189_v47 = vpop.f32.mrf.mxu2 }
  0xb6   :  { %v190_v54 = vadd.f32 %v189_v47, %v167_v51 }
  0xb8   :  { %v212_v49 = vpop.f32.mrf.mxu3 }
  0xb9   :  { %v146_v50 = vpop.f32.mrf.mxu0  ;;  %v213_v57 = vadd.f32 %v212_v49, %v190_v54 }
  0xba   :  { %v147_v52 = vadd.f32 %v303_v45, %v146_v50 }
  0xbc   :  { %v169_v53 = vpop.f32.mrf.mxu1 }
  0xbd   :  { %v170_v56 = vadd.f32 %v169_v53, %v147_v52 }
  0xbf   :  { %v192_v55 = vpop.f32.mrf.mxu2 }
  0xc0   :  { %v193_v60 = vadd.f32 %v192_v55, %v170_v56 }
  0xc2   :  { %v215_v58 = vpop.f32.mrf.mxu3 }
  0xc3   :  { %v235_v59 = vpop.f32.mrf.mxu0  ;;  %v216_v0 = vadd.f32 %v215_v58, %v193_v60 }
  0xc4   :  { %v236_v61 = vadd.f32 %v235_v59, %v213_v57 }
  0xc5   :  { %v258_v62 = vpop.f32.mrf.mxu1 }
  0xc6   :  { %v259_v63 = vadd.f32 %v258_v62, %v236_v61 }
  0xc8   :  { %265 = vst.msk [vmem:[%s660_s3] sm:$0xff] %vm264_vm0, %v259_v63 }
  0xc9   :  { %v238_v1 = vpop.f32.mrf.mxu2 }
  0xca   :  { %v239_v2 = vadd.f32 %v238_v1, %v216_v0 }
  0xcb   :  { %v261_v3 = vpop.f32.mrf.mxu3 }
  0xcc   :  { %v262_v4 = vadd.f32 %v261_v3, %v239_v2 }
  0xce   :  { %266 = vst.msk [vmem:[%s660_s3 + $0x8] sm:$0xff] %vm264_vm0, %v262_v4 }

</bundles_post_ra>
